<compile_context>
chip_gen: v7x
topology: tpu7x:2x2x1
jax: 0.10.0
libtpu: 0.0.40
codegen_flags: <defaults>
</compile_context>

<pallas_src>
import jax
import jax.numpy as jnp
from jax.experimental import pallas as pl
from jax.experimental.pallas import tpu as pltpu

_LANE = 128


def _attn_bin_kernel(hard_ref, soft_ref, out_ref, acc_ref):
    step = pl.program_id(0)

    @pl.when(step == 0)
    def _():
        acc_ref[0] = jnp.float32(0.0)   # running numerator  sum(-log(soft[sel]))
        acc_ref[1] = jnp.float32(0.0)   # running denominator count(sel)

    hard = hard_ref[...]                       # native dtype, no wrapper up-cast
    soft = soft_ref[...].astype(jnp.float32)   # cast on the VPU (free slot)
    sel = hard == 1
    # PyTorch binary_cross_entropy clamps log() at -100.
    neg_log = -jnp.maximum(jnp.log(soft), -100.0)
    acc_ref[0] += jnp.sum(jnp.where(sel, neg_log, 0.0))
    acc_ref[1] += jnp.sum(sel.astype(jnp.float32))

    @pl.when(step == pl.num_programs(0) - 1)
    def _():
        # NOTE: matches torch semantics — an empty selection yields NaN (0/0).
        out_ref[0] = acc_ref[0] / acc_ref[1]


def attention_binarization_loss(hard_attention, soft_attention, *, block_rows=512):
    """BCE(soft[hard==1], ones, reduction='mean') via a tiled Pallas reduction."""
    assert hard_attention.shape == soft_attention.shape
    n = hard_attention.size

    # Lane-dense flat layout: (rows_padded, 128) with a grid over row tiles.
    rows = pl.cdiv(n, _LANE)
    br = min(block_rows, max(8, ((rows + 7) // 8) * 8))   # multiple of 8 sublanes
    rows_padded = ((rows + br - 1) // br) * br
    pad = rows_padded * _LANE - n

    h = hard_attention.reshape(-1)
    s = soft_attention.reshape(-1)
    if pad:
        h = jnp.pad(h, (0, pad))                     # pad hard with 0 -> never selected
        s = jnp.pad(s, (0, pad), constant_values=1)  # pad soft with 1 -> log() finite
    h = h.reshape(rows_padded, _LANE)
    s = s.reshape(rows_padded, _LANE)

    out = pl.pallas_call(
        _attn_bin_kernel,
        grid_spec=pltpu.PrefetchScalarGridSpec(
            num_scalar_prefetch=0,
            grid=(rows_padded // br,),
            in_specs=[pl.BlockSpec((br, _LANE), lambda i: (i, 0)),
                      pl.BlockSpec((br, _LANE), lambda i: (i, 0))],
            out_specs=pl.BlockSpec(memory_space=pltpu.MemorySpace.SMEM),
            scratch_shapes=[pltpu.SMEM((2,), jnp.float32)],
        ),
        out_shape=jax.ShapeDtypeStruct((1,), jnp.float32),
        compiler_params=pltpu.CompilerParams(
            dimension_semantics=("arbitrary",),      # reduction axis: resident SMEM acc
            vmem_limit_bytes=32 * 1024 * 1024,       # explicit, portable v5e/v6e/v7x
        ),
    )(h, s)
    return out[0]


if __name__ == "__main__":
    key = jax.random.PRNGKey(0)
    B, T_out, T_in = 2, 16, 8

    logits = jax.random.normal(key, (B, 1, T_out, T_in), dtype=jnp.float32)
    soft = jax.nn.softmax(logits, axis=-1)                        # soft attention in (0,1)
    hard = jax.nn.one_hot(jnp.argmax(soft, axis=-1), T_in,        # binarized attention
                          dtype=jnp.float32)

    loss = attention_binarization_loss(hard, soft)
    jax.block_until_ready(loss)

    # pure-JAX reference of the same BCE-over-selection semantics
    sel = hard == 1
    ref = jnp.sum(jnp.where(sel, -jnp.maximum(jnp.log(soft), -100.0), 0.0)) / jnp.sum(sel)

    assert bool(jnp.isfinite(loss)), loss
    assert bool(jnp.allclose(loss, ref, rtol=1e-5, atol=1e-5)), (loss, ref)
    print("KERNEL_OK")
</pallas_src>

<mosaic_0001>
module attributes {stable_mosaic.version = 11 : i64} {
  func.func @_attn_bin_kernel(%arg0: i32, %arg1: memref<8x128xf32, #tpu.memory_space<vmem>>, %arg2: memref<8x128xf32, #tpu.memory_space<vmem>>, %arg3: memref<1xf32, #tpu.memory_space<smem>>, %arg4: memref<2xf32, #tpu.memory_space<smem>>) attributes {dimension_semantics = [#tpu.dimension_semantics<arbitrary>], iteration_bounds = array<i64: 1>, scalar_prefetch = 0 : i64, scratch_operands = 1 : i64, tpu.core_type = #tpu.core_type<tc>, window_params = [{transform_indices = @transform_0, window_bounds = array<i64: 8, 128>}, {transform_indices = @transform_1, window_bounds = array<i64: 8, 128>}, {transform_indices = @transform_2, window_bounds = array<i64: 1>}]} {
    %c0_i32 = arith.constant 0 : i32
    %0 = arith.cmpi eq, %arg0, %c0_i32 : i32
    %1 = arith.extui %0 : i1 to i32
    %c0_i32_0 = arith.constant 0 : i32
    %2 = arith.cmpi ne, %1, %c0_i32_0 : i32
    scf.if %2 {
      %cst_14 = arith.constant 0.000000e+00 : f32
      %c0_15 = arith.constant 0 : index
      %33 = memref.load %arg4[%c0_15] : memref<2xf32, #tpu.memory_space<smem>>
      memref.store %cst_14, %arg4[%c0_15] : memref<2xf32, #tpu.memory_space<smem>>
      %cst_16 = arith.constant 0.000000e+00 : f32
      %c1_17 = arith.constant 1 : index
      %34 = memref.load %arg4[%c1_17] : memref<2xf32, #tpu.memory_space<smem>>
      memref.store %cst_16, %arg4[%c1_17] : memref<2xf32, #tpu.memory_space<smem>>
    } else {
    }
    %c0 = arith.constant 0 : index
    %c0_1 = arith.constant 0 : index
    %3 = vector.load %arg1[%c0, %c0_1] : memref<8x128xf32, #tpu.memory_space<vmem>>, vector<8x128xf32>
    %c0_2 = arith.constant 0 : index
    %c0_3 = arith.constant 0 : index
    %4 = vector.load %arg2[%c0_2, %c0_3] : memref<8x128xf32, #tpu.memory_space<vmem>>, vector<8x128xf32>
    %cst = arith.constant 1.000000e+00 : f32
    %5 = vector.broadcast %cst : f32 to vector<8x128xf32>
    %6 = arith.cmpf oeq, %3, %5 : vector<8x128xf32>
    %7 = math.log %4 : vector<8x128xf32>
    %cst_4 = arith.constant -1.000000e+02 : f32
    %8 = vector.broadcast %cst_4 : f32 to vector<8x128xf32>
    %9 = arith.maximumf %7, %8 : vector<8x128xf32>
    %cst_5 = arith.constant 0.000000e+00 : f32
    %10 = vector.broadcast %cst_5 : f32 to vector<8x128xf32>
    %11 = arith.subf %10, %9 : vector<8x128xf32>
    %c0_6 = arith.constant 0 : index
    %12 = memref.load %arg4[%c0_6] : memref<2xf32, #tpu.memory_space<smem>>
    %cst_7 = arith.constant 0.000000e+00 : f32
    %13 = vector.broadcast %cst_7 : f32 to vector<8x128xf32>
    %14 = arith.select %6, %11, %13 : vector<8x128xi1>, vector<8x128xf32>
    %15 = vector.shape_cast %14 : vector<8x128xf32> to vector<1x8x128xf32>
    %cst_8 = arith.constant dense<0.000000e+00> : vector<1xf32>
    %16 = vector.multi_reduction <add>, %15, %cst_8 [1, 2] : vector<1x8x128xf32> to vector<1xf32>
    %17 = vector.shape_cast %16 : vector<1xf32> to vector<1x1x1xf32>
    %18 = vector.extract %17[0, 0, 0] : f32 from vector<1x1x1xf32>
    %19 = arith.addf %12, %18 : f32
    %c0_9 = arith.constant 0 : index
    %20 = memref.load %arg4[%c0_9] : memref<2xf32, #tpu.memory_space<smem>>
    memref.store %19, %arg4[%c0_9] : memref<2xf32, #tpu.memory_space<smem>>
    %c1 = arith.constant 1 : index
    %21 = memref.load %arg4[%c1] : memref<2xf32, #tpu.memory_space<smem>>
    %22 = arith.extui %6 : vector<8x128xi1> to vector<8x128xi32>
    %23 = arith.sitofp %22 : vector<8x128xi32> to vector<8x128xf32>
    %24 = vector.shape_cast %23 : vector<8x128xf32> to vector<1x8x128xf32>
    %cst_10 = arith.constant dense<0.000000e+00> : vector<1xf32>
    %25 = vector.multi_reduction <add>, %24, %cst_10 [1, 2] : vector<1x8x128xf32> to vector<1xf32>
    %26 = vector.shape_cast %25 : vector<1xf32> to vector<1x1x1xf32>
    %27 = vector.extract %26[0, 0, 0] : f32 from vector<1x1x1xf32>
    %28 = arith.addf %21, %27 : f32
    %c1_11 = arith.constant 1 : index
    %29 = memref.load %arg4[%c1_11] : memref<2xf32, #tpu.memory_space<smem>>
    memref.store %28, %arg4[%c1_11] : memref<2xf32, #tpu.memory_space<smem>>
    %c0_i32_12 = arith.constant 0 : i32
    %30 = arith.cmpi eq, %arg0, %c0_i32_12 : i32
    %31 = arith.extui %30 : i1 to i32
    %c0_i32_13 = arith.constant 0 : i32
    %32 = arith.cmpi ne, %31, %c0_i32_13 : i32
    scf.if %32 {
      %c0_14 = arith.constant 0 : index
      %33 = memref.load %arg4[%c0_14] : memref<2xf32, #tpu.memory_space<smem>>
      %c1_15 = arith.constant 1 : index
      %34 = memref.load %arg4[%c1_15] : memref<2xf32, #tpu.memory_space<smem>>
      %35 = arith.divf %33, %34 : f32
      %c0_16 = arith.constant 0 : index
      %36 = memref.load %arg3[%c0_16] : memref<1xf32, #tpu.memory_space<smem>>
      memref.store %35, %arg3[%c0_16] : memref<1xf32, #tpu.memory_space<smem>>
    } else {
    }
    return
  }
  func.func @transform_0(%arg0: i32) -> (i32, i32) {
    %c0_i32 = arith.constant 0 : i32
    %c0_i32_0 = arith.constant 0 : i32
    return %arg0, %c0_i32 : i32, i32
  }
  func.func @transform_1(%arg0: i32) -> (i32, i32) {
    %c0_i32 = arith.constant 0 : i32
    %c0_i32_0 = arith.constant 0 : i32
    return %arg0, %c0_i32 : i32, i32
  }
  func.func @transform_2(%arg0: i32) -> i32 {
    %c0_i32 = arith.constant 0 : i32
    %c0_i32_0 = arith.constant 0 : i32
    return %c0_i32 : i32
  }
}

</mosaic_0001>

<bundles_post_ra>
// kernel: tpu_custom_call.1
= control target key start
LH: loop header
LB: loop body
LE: loop exit
PB: predicated region body
PF: predicated region fallthrough
CT: control target
= control target key end

     0   :  { %7 = vsyncpa [#allocation4], 0  ;;  %s238_s0 = inlined_call_operand.hbm [shape: f32[8,128], index: 0, kind: input, shape index: {}]   ;;  %s239_s1 = inlined_call_operand.hbm [shape: f32[8,128], index: 1, kind: input, shape index: {}]   ;;  %s240_s2 = inlined_call_operand.hbm [shape: f32[1], index: 2, kind: output, shape index: {}]  }
   0x1   :  { %8 = vsyncpa [#allocation7], 0 }
   0x2   :  { %9 = vsyncpa [#allocation5], 0  ;;  %s183_s9 = smov [#allocation3]   ;;  %s184_s11 = smov [#allocation6]  }
   0x3   :  { %s16_s10 = sshll.u32 %s183_s9, 4  ;;  %s26_s12 = sshll.u32 %s184_s11, 4  ;;  %s17_s10 = int_to_ptr.vmem [resolvable:$true] %s16_s10  ;;  %s27_s12 = int_to_ptr.vmem [resolvable:$true] %s26_s12 }
   0x4   :  { %s123_s15 = scalar_lea.hbm %s238_s0, 128 }
   0x5   :  { %p124_p0 = scmp.ne.s32.totalorder %s238_s0, %s123_s15  ;;  %p127_p1 = scmp.lt.u32.totalorder %s123_s15, %s238_s0 }
   0x7   :  { %p129_p2 = pnand %p127_p1, %p124_p0 }
   0x9   :  { %132 = shalt.err (!%p129_p2)
}
   0xa   :  { %s133_s20 = scalar_lea.vmem %s17_s10, 128  ;;  %p138_p4 = scmp.lt.s32.totalorder %s17_s10, %s17_s10 }
   0xb   :  { %p134_p3 = scmp.ne.s32.totalorder %s17_s10, %s133_s20  ;;  %p139_p5 = scmp.lt.s32.totalorder %s133_s20, %s133_s20 }
   0xd   :  { %p140_p6 = por %p139_p5, %p138_p4 }
   0xf   :  { %p141_p7 = pnand %p140_p6, %p134_p3 }
  0x11   :  { %144 = shalt.err (!%p141_p7)
}
  0x12   :  { %19 = dma.hbm_to_vmem [thread:$0]  %s238_s0, 128, %s17_s10, [#allocation4]  }
  0x13   :  { %s145_s25 = scalar_lea.hbm %s239_s1, 128 }
  0x14   :  { %p146_p8 = scmp.ne.s32.totalorder %s239_s1, %s145_s25  ;;  %p149_p9 = scmp.lt.u32.totalorder %s145_s25, %s239_s1 }
  0x16   :  { %p151_p10 = pnand %p149_p9, %p146_p8 }
  0x18   :  { %154 = shalt.err (!%p151_p10)
}
  0x19   :  { %s155_s30 = scalar_lea.vmem %s27_s12, 128  ;;  %p160_p12 = scmp.lt.s32.totalorder %s27_s12, %s27_s12 }
  0x1a   :  { %p156_p11 = scmp.ne.s32.totalorder %s27_s12, %s155_s30  ;;  %p161_p13 = scmp.lt.s32.totalorder %s155_s30, %s155_s30 }
  0x1c   :  { %p162_p0 = por %p161_p13, %p160_p12 }
  0x1e   :  { %p163_p1 = pnand %p162_p0, %p156_p11 }
  0x20   :  { %166 = shalt.err (!%p163_p1)
}
  0x21   :  { %29 = dma.hbm_to_vmem [thread:$0]  %s239_s1, 128, %s27_s12, [#allocation7]  }
  0x22   :  { %177 = dma.done.wait [#allocation4], 128  }
  0x23   :  { %178 = vsyncadd [#allocation4], 4294967168 }
  0x24   :  { %179 = dma.done.wait [#allocation7], 128  }
  0x25   :  { %180 = vsyncadd [#allocation7], 4294967168  ;;  %v45_v0 = vld [vmem:[#allocation6] sm:$0xff]  ;;  %v44_v2 = vld [vmem:[#allocation3] sm:$0xff]  ;;  %v185_v7 = vmov 0.0   ;;  %s167_s9 = scalar_lea.hbm %s240_s2, 16 }
  0x26   :  { %119 = vlog2.f32 %v45_v0  ;;  %vm46_vm0 = vcmp.eq.f32.partialorder %v44_v2, 1.0  ;;  %p168_p2 = scmp.ne.s32.totalorder %s240_s2, %s167_s9  ;;  %p171_p3 = scmp.lt.u32.totalorder %s167_s9, %s240_s2 }
  0x27   :  { %v107_v8 = vsel %vm46_vm0, 1.0, %v185_v7 }
  0x28   :  { %p173_p4 = pnand %p171_p3, %p168_p2 }
  0x30   :  { %v120_v1 = vpop.eup %119 }
  0x31   :  { %v48_v3 = vmul.f32 0.6931472, %v120_v1 }
  0x33   :  { %v49_v4 = vmax.f32 %v48_v3, -100.0 }
  0x35   :  { %v50_v5 = vsub.f32 0.0, %v49_v4 }
  0x37   :  { %v52_v6 = vsel %vm46_vm0, %v50_v5, 0.0 }
  0x38   :  { %53 = vadd.xlane.f32.xlu0 %v52_v6 }
  0x3c   :  { %68 = vadd.xlane.f32.xlu0 %v107_v8 }
  0xc5   :  { %v54_v9 = vpop.xlane.xlu0 %53 }
  0xc6   :  { %v55_v10 = vrot.slane %v54_v9, 4 }
  0xc8   :  { %v56_v11 = vadd.f32 %v55_v10, %v54_v9 }
  0xc9   :  { %v69_v12 = vpop.xlane.xlu0 %68 }
  0xca   :  { %v57_v13 = vrot.slane %v56_v11, 2  ;;  %v70_v14 = vrot.slane %v69_v12, 4 }
  0xcc   :  { %v71_v15 = vadd.f32 %v70_v14, %v69_v12  ;;  %v58_v16 = vadd.f32 %v57_v13, %v56_v11 }
  0xce   :  { %v72_v17 = vrot.slane %v71_v15, 2  ;;  %v59_v18 = vrot.slane %v58_v16, 1 }
  0xd0   :  { %v73_v19 = vadd.f32 %v72_v17, %v71_v15  ;;  %v60_v20 = vadd.f32 %v59_v18, %v58_v16 }
  0xd2   :  { %109 = vpush %v60_v20  ;;  %v74_v21 = vrot.slane %v73_v19, 1 }
  0xd4   :  { %v75_v22 = vadd.f32 %v74_v21, %v73_v19 }
  0xd6   :  { %111 = vpush %v75_v22 }
 0x103   :  { %s110_s1 = spop %109 }
 0x107   :  { %s112_s4 = spop %111 }
 0x108   :  { %v85_v23 = vstv %s112_s4 }
 0x109   :  { %121 = vrcp.f32 %v85_v23 }
 0x113   :  { %v122_v24 = vpop.eup %121 }
 0x114   :  { %113 = vpush %v122_v24 }
 0x145   :  { %s114_s5 = spop %113 }
 0x146   :  { %s88_s6 = smul.f32 %s114_s5, %s110_s1 }
 0x148   :  { %90 = sst [smem:[#allocation8]] %s88_s6 }
 0x149   :  { %176 = shalt.err (!%p173_p4)
}
 0x14a   :  { %s186_s14 = smov [#allocation8]  }
 0x14b   :  { %98 = dma.smem_to_hbm %s186_s14, 16, %s240_s2, [#allocation5]  }
 0x14c   :  { %181 = dma.done.wait [#allocation5], 16  }
 0x14d   :  { %182 = vsyncadd [#allocation5], 4294967280 }
 0x14e   :  { %102 = sfence }
 0x14f   :  { %103 = vsyncpa [#allocation4], 1 }
 0x150   :  { %104 = vsyncpa [#allocation7], 1 }
 0x151   :  { %105 = vsyncpa [#allocation5], 1 }

</bundles_post_ra>
